<compile_context>
chip_gen: v5e
topology: v5e:2x2
jax: 0.10.0
libtpu: 0.0.40
codegen_flags: <defaults>
</compile_context>

<pallas_src>
import jax
import jax.numpy as jnp
from jax.experimental import pallas as pl
from jax.experimental.pallas import tpu as pltpu


def _route_dma_kernel(x2_ref, x1_ref, out_ref, sem):
    # Refs stay in their original memory space (HBM for real activations).
    # x2_ref: (N, C2*HW), x1_ref: (N, C1*HW), out_ref: (N, (C2+C1)*HW).
    # Two rectangular DMAs place x2 into the leading columns and x1 into the
    # trailing columns of every flattened output row. Both windows are
    # contiguous per row, so each transfer is an unmasked, dense slab copy.
    c2hw = x2_ref.shape[1]
    c1hw = x1_ref.shape[1]
    cp2 = pltpu.make_async_copy(x2_ref, out_ref.at[:, pl.ds(0, c2hw)], sem.at[0])
    cp1 = pltpu.make_async_copy(x1_ref, out_ref.at[:, pl.ds(c2hw, c1hw)], sem.at[1])
    cp2.start()
    cp1.start()
    cp2.wait()
    cp1.wait()


def route(x1, x2):
    """Equivalent of Route.forward(x1, x2) == concat((x2, x1), axis=1) in NCHW."""
    assert x1.ndim == 4 and x2.ndim == 4
    n, c1, h, w = x1.shape
    n2, c2, h2, w2 = x2.shape
    assert (n, h, w) == (n2, h2, w2), "batch/spatial dims must match"
    assert x1.dtype == x2.dtype
    hw = h * w
    c_out = c2 + c1

    # Contiguous per-batch slabs: concat becomes two slab memcpys per row.
    x1f = x1.reshape(n, c1 * hw)
    x2f = x2.reshape(n, c2 * hw)

    out_flat = pl.pallas_call(
        _route_dma_kernel,
        out_shape=jax.ShapeDtypeStruct((n, c_out * hw), x1.dtype),
        in_specs=[
            pl.BlockSpec(memory_space=pl.ANY),  # x2 stays in HBM, no auto-DMA
            pl.BlockSpec(memory_space=pl.ANY),  # x1 stays in HBM, no auto-DMA
        ],
        out_specs=pl.BlockSpec(memory_space=pl.ANY),  # output written by DMA
        scratch_shapes=[pltpu.SemaphoreType.DMA((2,))],
    )(x2f, x1f)

    return out_flat.reshape(n, c_out, h, w)


if __name__ == "__main__":
    key = jax.random.PRNGKey(0)
    k1, k2 = jax.random.split(key)

    # Small NCHW inputs consistent with the module's forward.
    x1 = jax.random.normal(k1, (2, 4, 16, 16), dtype=jnp.float32)
    x2 = jax.random.normal(k2, (2, 6, 16, 16), dtype=jnp.float32)

    out = route(x1, x2)
    out = jax.block_until_ready(out)

    ref = jnp.concatenate((x2, x1), axis=1)
    assert out.shape == ref.shape, (out.shape, ref.shape)
    assert out.dtype == ref.dtype
    assert jnp.array_equal(out, ref), "mismatch vs reference concat"

    print("KERNEL_OK")
</pallas_src>

<mosaic_0001>
module attributes {stable_mosaic.version = 11 : i64} {
  func.func @_route_dma_kernel(%arg0: memref<2x1536xf32, #tpu.memory_space<any>>, %arg1: memref<2x1024xf32, #tpu.memory_space<any>>, %arg2: memref<2x2560xf32, #tpu.memory_space<any>>, %arg3: memref<2x!tpu.dma_semaphore, #tpu.memory_space<semaphore_mem>>) attributes {dimension_semantics = [], scalar_prefetch = 0 : i64, scratch_operands = 1 : i64, tpu.core_type = #tpu.core_type<tc>} {
    %c0_i32 = arith.constant 0 : i32
    %c0_i32_0 = arith.constant 0 : i32
    %c0_i32_1 = arith.constant 0 : i32
    %0 = tpu.memref_slice %arg2[%c0_i32_0, %c0_i32_1] : memref<2x2560xf32, #tpu.memory_space<any>> -> memref<2x1536xf32, #tpu.memory_space<any>>
    %1 = tpu.memref_slice %arg3[%c0_i32] : memref<2x!tpu.dma_semaphore, #tpu.memory_space<semaphore_mem>> -> memref<1x!tpu.dma_semaphore, #tpu.memory_space<semaphore_mem>>
    %2 = tpu.memref_squeeze %1 : memref<1x!tpu.dma_semaphore, #tpu.memory_space<semaphore_mem>> -> memref<!tpu.dma_semaphore, #tpu.memory_space<semaphore_mem>>
    tpu.enqueue_dma source(%arg0 : memref<2x1536xf32, #tpu.memory_space<any>>) target(%0 : memref<2x1536xf32, #tpu.memory_space<any>>) target_semaphore(%2 : memref<!tpu.dma_semaphore, #tpu.memory_space<semaphore_mem>>)
    %c1_i32 = arith.constant 1 : i32
    %c0_i32_2 = arith.constant 0 : i32
    %c1536_i32 = arith.constant 1536 : i32
    %3 = tpu.memref_slice %arg2[%c0_i32_2, %c1536_i32] : memref<2x2560xf32, #tpu.memory_space<any>> -> memref<2x1024xf32, #tpu.memory_space<any>>
    %4 = tpu.memref_slice %arg3[%c1_i32] : memref<2x!tpu.dma_semaphore, #tpu.memory_space<semaphore_mem>> -> memref<1x!tpu.dma_semaphore, #tpu.memory_space<semaphore_mem>>
    %5 = tpu.memref_squeeze %4 : memref<1x!tpu.dma_semaphore, #tpu.memory_space<semaphore_mem>> -> memref<!tpu.dma_semaphore, #tpu.memory_space<semaphore_mem>>
    tpu.enqueue_dma source(%arg1 : memref<2x1024xf32, #tpu.memory_space<any>>) target(%3 : memref<2x1024xf32, #tpu.memory_space<any>>) target_semaphore(%5 : memref<!tpu.dma_semaphore, #tpu.memory_space<semaphore_mem>>)
    %c0_i32_3 = arith.constant 0 : i32
    %c0_i32_4 = arith.constant 0 : i32
    %c0_i32_5 = arith.constant 0 : i32
    %6 = tpu.memref_slice %arg2[%c0_i32_4, %c0_i32_5] : memref<2x2560xf32, #tpu.memory_space<any>> -> memref<2x1536xf32, #tpu.memory_space<any>>
    %7 = tpu.memref_slice %arg3[%c0_i32_3] : memref<2x!tpu.dma_semaphore, #tpu.memory_space<semaphore_mem>> -> memref<1x!tpu.dma_semaphore, #tpu.memory_space<semaphore_mem>>
    %8 = tpu.memref_squeeze %7 : memref<1x!tpu.dma_semaphore, #tpu.memory_space<semaphore_mem>> -> memref<!tpu.dma_semaphore, #tpu.memory_space<semaphore_mem>>
    tpu.wait_dma2 semaphore(%8 : memref<!tpu.dma_semaphore, #tpu.memory_space<semaphore_mem>>) src(%arg0 : memref<2x1536xf32, #tpu.memory_space<any>>) dst(%6 : memref<2x1536xf32, #tpu.memory_space<any>>)
    %c1_i32_6 = arith.constant 1 : i32
    %c0_i32_7 = arith.constant 0 : i32
    %c1536_i32_8 = arith.constant 1536 : i32
    %9 = tpu.memref_slice %arg2[%c0_i32_7, %c1536_i32_8] : memref<2x2560xf32, #tpu.memory_space<any>> -> memref<2x1024xf32, #tpu.memory_space<any>>
    %10 = tpu.memref_slice %arg3[%c1_i32_6] : memref<2x!tpu.dma_semaphore, #tpu.memory_space<semaphore_mem>> -> memref<1x!tpu.dma_semaphore, #tpu.memory_space<semaphore_mem>>
    %11 = tpu.memref_squeeze %10 : memref<1x!tpu.dma_semaphore, #tpu.memory_space<semaphore_mem>> -> memref<!tpu.dma_semaphore, #tpu.memory_space<semaphore_mem>>
    tpu.wait_dma2 semaphore(%11 : memref<!tpu.dma_semaphore, #tpu.memory_space<semaphore_mem>>) src(%arg1 : memref<2x1024xf32, #tpu.memory_space<any>>) dst(%9 : memref<2x1024xf32, #tpu.memory_space<any>>)
    return
  }
}

</mosaic_0001>

<bundles_post_ra>
// kernel: tpu_custom_call.1
= control target key start
LH: loop header
LB: loop body
LE: loop exit
PB: predicated region body
PF: predicated region fallthrough
CT: control target
= control target key end

     0   :  { %s62_s18 = smov [#allocation2]   ;;  %s63_s19 = smov [#allocation3]   ;;  %s94_s0 = inlined_call_operand.hbm [shape: f32[2,1536], index: 0, kind: input, shape index: {}]   ;;  %s95_s2 = inlined_call_operand.hbm [shape: f32[2,2560], index: 2, kind: output, shape index: {}]   ;;  %s96_s1 = inlined_call_operand.hbm [shape: f32[2,1024], index: 1, kind: input, shape index: {}]  }
   0x1   :  { %s11_s11 = sshll.u32 %s94_s0, 4  ;;  %s13_s14 = sshll.u32 %s95_s2, 4  ;;  %s12_s11 = int_to_ptr.hbm [resolvable:$true] %s11_s11  ;;  %s14_s14 = int_to_ptr.hbm [resolvable:$true] %s13_s14 }
   0x2   :  { %s18_s17 = scalar_lea.hbm %s95_s2, 24  ;;  %s64_s20 = smov 0  }
   0x3   :  { %17 = dma.general %s12_s11, 384, %s14_s14, %s62_s18, %s63_s19, [#allocation4], %s64_s20, 0  }
   0x4   :  { %s26_s21 = sshll.u32 %s18_s17, 4  ;;  %s24_s24 = sshll.u32 %s96_s1, 4  ;;  %s25_s24 = int_to_ptr.hbm [resolvable:$true] %s24_s24  ;;  %s27_s21 = int_to_ptr.hbm [resolvable:$true] %s26_s21 }
   0x5   :  { %s65_s0 = smov [#allocation2 + $0x1]   ;;  %s66_s25 = smov [#allocation5]  }
   0x6   :  { %30 = dma.general %s25_s24, 256, %s27_s21, %s65_s0, %s66_s25, [#allocation6], %s64_s20, 0  }
   0x7   :  { %58 = dma.done.wait [#allocation2], 384 }
   0x8   :  { %59 = vsyncadd [#allocation2], 4294966912 }
   0x9   :  { %60 = dma.done.wait [#allocation2 + $0x1], 256 }
   0xa   :  { %61 = vsyncadd [#allocation2 + $0x1], 4294967040 }
   0xb   :  { %38 = vsyncmov [#allocation2] }
   0xe   :  { %s39_s2 = vpop.sfrf %38 }
   0xf   :  { %p51_p0 = scmp.ne.s32.totalorder %s39_s2, 0 }
  0x11   :  { %43 = shalt.err (%p51_p0)  }
  0x12   :  { %45 = vsyncmov [#allocation2 + $0x1] }
  0x15   :  { %s46_s26 = vpop.sfrf %45 }
  0x16   :  { %p52_p1 = scmp.ne.s32.totalorder %s46_s26, 0 }
  0x18   :  { %50 = shalt.err (%p52_p1)  }

</bundles_post_ra>
